<compile_context>
chip_gen: v7x
topology: tpu7x:2x2x1
jax: 0.10.0
libtpu: 0.0.40
codegen_flags: <defaults>
</compile_context>

<pallas_src>
import functools

import jax
import jax.numpy as jnp
from jax.experimental import pallas as pl
from jax.experimental.pallas import tpu as pltpu


# ---------------------------------------------------------------------------
# Kernel 1: kNN scores.  score[r, m] = 2 * <x_r, x_m> - ||x_m||^2, which is
# the reference pairwise distance shifted by the per-row constant +||x_r||^2
# (identical top_k indices).  ||x_m||^2 is precomputed per batch in XLA.
# ---------------------------------------------------------------------------
def _pairwise_kernel(xf_ref, xt_ref, xx_ref, out_ref):
    # xf_ref: (1, C, N) all points (resident per batch)
    # xt_ref: (1, C, tn) row tile
    # xx_ref: (1, 1, N)  precomputed ||x_m||^2 (resident per batch)
    # out_ref: (1, tn, N)
    inner = jax.lax.dot_general(
        xt_ref[0], xf_ref[0],
        dimension_numbers=(((0,), (0,)), ((), ())),
        preferred_element_type=jnp.float32)                  # (tn, N)
    out_ref[0] = (2.0 * inner - xx_ref[0]).astype(out_ref.dtype)


def pairwise_knn_scores(x, tn, scores_dtype):
    B, C, N = x.shape
    xx = jnp.sum(jnp.square(x.astype(jnp.float32)), axis=1, keepdims=True)
    itemsize = jnp.dtype(scores_dtype).itemsize
    return pl.pallas_call(
        _pairwise_kernel,
        out_shape=jax.ShapeDtypeStruct((B, N, N), scores_dtype),
        grid=(B, N // tn),
        in_specs=[
            pl.BlockSpec((1, C, N), lambda b, i: (b, 0, 0)),   # resident
            pl.BlockSpec((1, C, tn), lambda b, i: (b, 0, i)),  # row tile
            pl.BlockSpec((1, 1, N), lambda b, i: (b, 0, 0)),   # ||x_m||^2
        ],
        out_specs=pl.BlockSpec((1, tn, N), lambda b, i: (b, i, 0)),
        compiler_params=pltpu.CompilerParams(
            dimension_semantics=("parallel", "parallel"),
            vmem_limit_bytes=32 * 1024 * 1024),
        cost_estimate=pl.CostEstimate(
            flops=int(2 * B * N * N * C),
            transcendentals=0,
            bytes_accessed=int(2 * B * C * N * x.dtype.itemsize
                               + B * N * 4 + B * N * N * itemsize)),
    )(x, x, xx)


def knn_indices(x, k, tn, scores_dtype):
    scores = pairwise_knn_scores(x, tn, scores_dtype)        # (B, N, N)
    return jax.lax.top_k(scores, k)[1]                       # (B, N, k) int32


# ---------------------------------------------------------------------------
# Kernel 2: fused (hoisted 1x1 conv + folded BN) -> one-hot MXU gather of the
# k neighbors -> running max -> + center term -> LeakyReLU.  The per-batch
# transformed table lives in persistent VMEM scratch (built once per batch).
# ---------------------------------------------------------------------------
def _econv_gather_kernel(xf_ref, xt_ref, wn_ref, ws_ref, bias_ref, idx_ref,
                         out_ref, table_ref, *, neg_slope):
    # xf_ref:   (1, C, N)   all points (resident per batch)
    # xt_ref:   (1, C, tn)  center points of this tile
    # wn_ref:   (O, C)      (W_a * bn_scale)^T            -- neighbor term
    # ws_ref:   (O, C)      ((W_b - W_a) * bn_scale)^T    -- center term
    # bias_ref: (O, 1)      folded BN bias
    # idx_ref:  (1, k, tn)  kNN indices (slot major, points in lanes)
    # out_ref:  (1, O, tn)
    # table_ref: VMEM scratch (O, N), persists across the N-tile loop
    i = pl.program_id(1)
    k = idx_ref.shape[1]
    tn = idx_ref.shape[2]
    n = xf_ref.shape[2]

    # Per-batch invariant: hoisted 1x1 conv of all points (BN scale folded).
    # N axis is "arbitrary", so this runs once per batch (at tile i == 0).
    @pl.when(i == 0)
    def _():
        tbl = jnp.dot(wn_ref[...], xf_ref[0],
                      preferred_element_type=jnp.float32)    # (O, N)
        table_ref[...] = tbl.astype(table_ref.dtype)

    center = jnp.dot(ws_ref[...], xt_ref[0],
                     preferred_element_type=jnp.float32) + bias_ref[...]  # (O, tn)

    table = table_ref[...]                                   # (O, N) gather dtype
    row_ids = jax.lax.broadcasted_iota(jnp.int32, (n, tn), 0)  # hoisted out of loop

    def body(j, carry):
        sel = idx_ref[0, pl.ds(j, 1), :]                     # (1, tn) int32
        onehot = (row_ids == sel).astype(table.dtype)        # (n, tn), bf16 path
        g = jnp.dot(table, onehot,
                    preferred_element_type=jnp.float32)      # (O, tn) f32 acc
        return jnp.maximum(carry, g)

    neigh_max = jax.lax.fori_loop(
        0, k, body, jnp.full(center.shape, -jnp.inf, jnp.float32), unroll=2)

    # LeakyReLU is monotone -> max over k commutes with it.
    y = neigh_max + center
    out_ref[0] = jnp.where(y > 0, y, neg_slope * y).astype(out_ref.dtype)


def econv_gather_max(x, wn_t, ws_t, bias_col, idx_t, tn, out_dtype,
                     gather_dtype, neg_slope=0.2):
    B, C, N = x.shape
    O = wn_t.shape[0]
    k = idx_t.shape[1]
    kernel = functools.partial(_econv_gather_kernel, neg_slope=neg_slope)
    return pl.pallas_call(
        kernel,
        out_shape=jax.ShapeDtypeStruct((B, O, N), out_dtype),
        grid=(B, N // tn),
        in_specs=[
            pl.BlockSpec((1, C, N), lambda b, i: (b, 0, 0)),    # all points
            pl.BlockSpec((1, C, tn), lambda b, i: (b, 0, i)),   # center tile
            pl.BlockSpec((O, C), lambda b, i: (0, 0)),          # neighbor weight
            pl.BlockSpec((O, C), lambda b, i: (0, 0)),          # center weight
            pl.BlockSpec((O, 1), lambda b, i: (0, 0)),          # BN bias
            pl.BlockSpec((1, k, tn), lambda b, i: (b, 0, i)),   # kNN indices
        ],
        out_specs=pl.BlockSpec((1, O, tn), lambda b, i: (b, 0, i)),
        scratch_shapes=[pltpu.VMEM((O, N), gather_dtype)],      # per-batch table
        compiler_params=pltpu.CompilerParams(
            # Batch axis parallel (v7x megacore); N axis arbitrary so the
            # pl.when(i==0) table hoist is valid.
            dimension_semantics=("parallel", "arbitrary"),
            vmem_limit_bytes=48 * 1024 * 1024),
        cost_estimate=pl.CostEstimate(
            flops=int(2 * B * k * O * N * N + 4 * B * O * C * N),
            transcendentals=0,
            bytes_accessed=int(B * C * N * x.dtype.itemsize + B * k * N * 4
                               + B * O * N * jnp.dtype(out_dtype).itemsize)),
    )(x, x, wn_t, ws_t, bias_col, idx_t)


# ---------------------------------------------------------------------------
# Forward wrapper (matches PyTorch Econv.forward, inference-mode BN)
# ---------------------------------------------------------------------------
def _pick_tile(n, preferred):
    for t in (preferred, 256, 128):
        if t <= n and n % t == 0:
            return t
    return n


def _fold_bn(params, C):
    eps = 1e-5
    scale = params["gamma"] / jnp.sqrt(params["var"] + eps)   # (O,)
    bias = params["beta"] - params["mean"] * scale            # (O,)
    w = params["w"]                                           # (2C, O)
    wa, wb = w[:C], w[C:]
    wn_t = jnp.transpose(wa * scale[None, :])                 # (O, C) neighbor
    ws_t = jnp.transpose((wb - wa) * scale[None, :])          # (O, C) center
    return wn_t, ws_t, bias[:, None]


def econv_forward(x, params, k, *, idx=None,
                  scores_dtype=jnp.bfloat16, gather_dtype=jnp.bfloat16,
                  tile_n_scores=128, tile_n_gather=256, neg_slope=0.2):
    B, C, N = x.shape
    if idx is None:
        idx = knn_indices(x, k, _pick_tile(N, tile_n_scores), scores_dtype)
    idx_t = jnp.transpose(idx.astype(jnp.int32), (0, 2, 1))   # (B, k, N)
    wn_t, ws_t, bias_col = _fold_bn(params, C)
    tng = _pick_tile(N, tile_n_gather)
    return econv_gather_max(x, wn_t, ws_t, bias_col, idx_t, tng, x.dtype,
                            gather_dtype, neg_slope)


# ---------------------------------------------------------------------------
# Pure-JAX references (faithful port of the PyTorch module, inference BN)
# ---------------------------------------------------------------------------
def ref_knn(x, k):
    inner = -2.0 * jnp.einsum("bcn,bcm->bnm", x, x)
    xx = jnp.sum(x * x, axis=1, keepdims=True)
    pd = -xx - inner - jnp.transpose(xx, (0, 2, 1))
    return jax.lax.top_k(pd, k)[1]                            # (B, N, k)


def ref_from_idx(x, params, idx, neg_slope=0.2):
    x_t = jnp.transpose(x, (0, 2, 1))                         # (B, N, C)
    feature = jax.vmap(lambda a, i: a[i])(x_t, idx)           # (B, N, k, C)
    center = jnp.broadcast_to(x_t[:, :, None, :], feature.shape)
    feat = jnp.concatenate([feature - center, center], axis=-1)
    y = jnp.einsum("bnkc,co->bnko", feat, params["w"])
    eps = 1e-5
    scale = params["gamma"] / jnp.sqrt(params["var"] + eps)
    bias = params["beta"] - params["mean"] * scale
    y = y * scale + bias
    y = jnp.where(y > 0, y, neg_slope * y)
    y = jnp.max(y, axis=2)                                    # (B, N, O)
    return jnp.transpose(y, (0, 2, 1))                        # (B, O, N)


def ref_forward(x, params, k):
    return ref_from_idx(x, params, ref_knn(x, k))


if __name__ == "__main__":
    # Small shapes consistent with the module defaults:
    # points x (B, 3, N), In_dims = 2*3 = 6, Out_dims = 64, k = 20.
    B, C, N, K, O = 2, 3, 256, 20, 64
    key = jax.random.PRNGKey(0)
    kx, kw, kg, kb = jax.random.split(key, 4)

    x = jax.random.normal(kx, (B, C, N), dtype=jnp.float32)
    params = dict(
        # Conv2d(In_dims=2C, Out_dims=O, kernel_size=1, bias=False) weight,
        # stored as (2C, O) (i.e. pytorch weight[:, :, 0, 0].T)
        w=jax.random.normal(kw, (2 * C, O), dtype=jnp.float32) * 0.1,
        gamma=jax.random.normal(kg, (O,), dtype=jnp.float32),
        beta=jax.random.normal(kb, (O,), dtype=jnp.float32) * 0.1,
        mean=jnp.zeros((O,), jnp.float32),
        var=jnp.ones((O,), jnp.float32),
    )

    # (1) Exact path (f32 scores, f32 gather) vs the faithful reference:
    # validates the conv-hoist / BN-fold / max-LReLU fusion bit-for-bit
    # (to 1e-4) against the PyTorch-equivalent math.
    out_exact = jax.block_until_ready(
        econv_forward(x, params, K,
                      scores_dtype=jnp.float32, gather_dtype=jnp.float32))
    ref = jax.block_until_ready(ref_forward(x, params, K))
    assert out_exact.shape == (B, O, N), out_exact.shape
    assert jnp.allclose(out_exact, ref, atol=1e-4, rtol=1e-4), \
        "exact path mismatch vs reference"

    # (2) Fast path (default: bf16 scores + bf16 one-hot gather).  bf16
    # scores may legitimately pick a different near-equidistant neighbor, so
    # validate the fused conv/gather/max math against a reference driven by
    # the same indices, at bf16-level tolerance.
    idx_fast = knn_indices(x, K, _pick_tile(N, 128), jnp.bfloat16)
    out_fast = jax.block_until_ready(econv_forward(x, params, K, idx=idx_fast))
    ref_fast = jax.block_until_ready(ref_from_idx(x, params, idx_fast))
    assert out_fast.shape == (B, O, N), out_fast.shape
    assert jnp.allclose(out_fast, ref_fast, atol=2e-2, rtol=2e-2), \
        "fast (bf16) path mismatch vs same-index reference"

    print("KERNEL_OK")
</pallas_src>

<mosaic_0001>
module attributes {stable_mosaic.version = 11 : i64} {
  func.func @_pairwise_kernel(%arg0: i32, %arg1: i32, %arg2: memref<1x3x256xf32, #tpu.memory_space<vmem>>, %arg3: memref<1x3x128xf32, #tpu.memory_space<vmem>>, %arg4: memref<1x1x256xf32, #tpu.memory_space<vmem>>, %arg5: memref<1x128x256xf32, #tpu.memory_space<vmem>>) attributes {dimension_semantics = [#tpu.dimension_semantics<parallel>, #tpu.dimension_semantics<parallel>], iteration_bounds = array<i64: 2, 2>, scalar_prefetch = 0 : i64, scratch_operands = 0 : i64, tpu.core_type = #tpu.core_type<tc>, window_params = [{transform_indices = @transform_0, window_bounds = array<i64: 1, 3, 256>}, {transform_indices = @transform_1, window_bounds = array<i64: 1, 3, 128>}, {transform_indices = @transform_2, window_bounds = array<i64: 1, 1, 256>}, {transform_indices = @transform_3, window_bounds = array<i64: 1, 128, 256>}]} {
    %c0 = arith.constant 0 : index
    %c0_0 = arith.constant 0 : index
    %c0_1 = arith.constant 0 : index
    %0 = vector.load %arg3[%c0, %c0_0, %c0_1] : memref<1x3x128xf32, #tpu.memory_space<vmem>>, vector<1x3x128xf32>
    %1 = vector.shape_cast %0 : vector<1x3x128xf32> to vector<3x128xf32>
    %c0_2 = arith.constant 0 : index
    %c0_3 = arith.constant 0 : index
    %c0_4 = arith.constant 0 : index
    %2 = vector.load %arg2[%c0_2, %c0_3, %c0_4] : memref<1x3x256xf32, #tpu.memory_space<vmem>>, vector<1x3x256xf32>
    %3 = vector.shape_cast %2 : vector<1x3x256xf32> to vector<3x256xf32>
    %cst = arith.constant dense<0.000000e+00> : vector<128x256xf32>
    %4 = tpu.matmul %1, %3, %cst {dimension_numbers = #tpu.dot_dimension_numbers<[0], [0], [1], [1], [0, 1, 1, 1], [], []>} : vector<3x128xf32>, vector<3x256xf32>, vector<128x256xf32> -> vector<128x256xf32>
    %cst_5 = arith.constant 2.000000e+00 : f32
    %5 = vector.broadcast %cst_5 : f32 to vector<128x256xf32>
    %6 = arith.mulf %5, %4 : vector<128x256xf32>
    %c0_6 = arith.constant 0 : index
    %c0_7 = arith.constant 0 : index
    %c0_8 = arith.constant 0 : index
    %7 = vector.load %arg4[%c0_6, %c0_7, %c0_8] : memref<1x1x256xf32, #tpu.memory_space<vmem>>, vector<1x1x256xf32>
    %8 = vector.shape_cast %7 : vector<1x1x256xf32> to vector<1x256xf32>
    %9 = vector.broadcast %8 : vector<1x256xf32> to vector<128x256xf32>
    %10 = arith.subf %6, %9 : vector<128x256xf32>
    %c0_9 = arith.constant 0 : index
    %c0_10 = arith.constant 0 : index
    %c0_11 = arith.constant 0 : index
    %11 = vector.load %arg5[%c0_9, %c0_10, %c0_11] : memref<1x128x256xf32, #tpu.memory_space<vmem>>, vector<1x128x256xf32>
    %12 = vector.shape_cast %11 : vector<1x128x256xf32> to vector<128x256xf32>
    %13 = vector.shape_cast %10 : vector<128x256xf32> to vector<1x128x256xf32>
    tpu.vector_store %arg5[%c0_9, %c0_10, %c0_11], %13 {strides = array<i32>} : memref<1x128x256xf32, #tpu.memory_space<vmem>>, vector<1x128x256xf32>,
    return
  }
  func.func @transform_0(%arg0: i32, %arg1: i32) -> (i32, i32, i32) {
    %c0_i32 = arith.constant 0 : i32
    %c0_i32_0 = arith.constant 0 : i32
    %c0_i32_1 = arith.constant 0 : i32
    return %arg0, %c0_i32, %c0_i32_0 : i32, i32, i32
  }
  func.func @transform_1(%arg0: i32, %arg1: i32) -> (i32, i32, i32) {
    %c0_i32 = arith.constant 0 : i32
    %c0_i32_0 = arith.constant 0 : i32
    return %arg0, %c0_i32, %arg1 : i32, i32, i32
  }
  func.func @transform_2(%arg0: i32, %arg1: i32) -> (i32, i32, i32) {
    %c0_i32 = arith.constant 0 : i32
    %c0_i32_0 = arith.constant 0 : i32
    %c0_i32_1 = arith.constant 0 : i32
    return %arg0, %c0_i32, %c0_i32_0 : i32, i32, i32
  }
  func.func @transform_3(%arg0: i32, %arg1: i32) -> (i32, i32, i32) {
    %c0_i32 = arith.constant 0 : i32
    %c0_i32_0 = arith.constant 0 : i32
    return %arg0, %arg1, %c0_i32 : i32, i32, i32
  }
}

</mosaic_0001>

<bundles_post_ra>
// kernel: tpu_custom_call.1
= control target key start
LH: loop header
LB: loop body
LE: loop exit
PB: predicated region body
PF: predicated region fallthrough
CT: control target
= control target key end

     0   :  { %8 = vsyncpa [#allocation3], 0  ;;  %s1210_s0 = inlined_call_operand.vmem [shape: f32[2,3,256], index: 0, kind: input, shape index: {}]   ;;  %s1211_s1 = inlined_call_operand.vmem [shape: f32[2,3,256], index: 1, kind: input, shape index: {}]   ;;  %s1212_s2 = inlined_call_operand.vmem [shape: f32[2,1,256], index: 2, kind: input, shape index: {}]   ;;  %s1213_s3 = inlined_call_operand.hbm [shape: f32[2,256,256], index: 3, kind: output, shape index: {}]  }
   0x1   :  { %10 = vsyncpa [#allocation3 + $0x1], 0  ;;  %s949_s12 = smov 0   ;;  %s951_s13 = smov 0  }
   0x2   :  { %s953_s14 = smov 0   ;;  %s955_s15 = smov 0  }
   0x3   :  { %s957_s16 = smov 0   ;;  %s959_s17 = smov 0  }
   0x4   :  { %s961_s18 = smov 0   ;;  %s963_s19 = smov 0  }
   0x5 LB: > { %s714_s20 = sadd.s32 4294967295, %s923_s19   ;;  %s715_s21 = sadd.s32 4294967294, %s923_s19   ;;  %s923_s19 = sphi %s963_s19, %s16_s19   ;;  %s919_s18 = sphi %s961_s18, %s1222_s18   ;;  %s915_s17 = sphi %s959_s17, %s1221_s17   ;;  %s911_s16 = sphi %s957_s16, %s1220_s16   ;;  %s907_s15 = sphi %s955_s15, %s1219_s15   ;;  %s903_s14 = sphi %s953_s14, %s1218_s14   ;;  %s899_s13 = sphi %s951_s13, %s1217_s13   ;;  %s895_s12 = sphi %s949_s12, %s1216_s12  }
   0x6   : > { %s25_s22 = sadd.s32 1, %s915_s17  ;;  %s28_s23 = sadd.s32 1, %s919_s18 }
   0x7   : > { %p26_p0 = scmp.ge.s32.totalorder %s25_s22, 2  ;;  %p127_p1 = scmp.ne.s32.totalorder %s903_s14, %s899_s13 }
   0x8   : > { %p128_p2 = scmp.eq.s32.totalorder %s714_s20, 3  ;;  %p133_p5 = scmp.ne.s32.totalorder %s899_s13, %s895_s12 }
   0x9   : > { %s1224_s22 = smov (%p26_p0, %s25_s22), 0  ;;  %s1226_s23 = smov (!%p26_p0, %s28_s23), %s919_s18 }
   0xa   : > { %s113_s24 = ssub.s32 %s915_s17, %s1224_s22  ;;  %p1000_p3 = por %p128_p2, %p127_p1 }
   0xb   : > { %p30_p4 = scmp.ge.s32.totalorder %s1226_s23, 2  ;;  %p134_p6 = scmp.eq.s32.totalorder %s715_s21, 3 }
   0xc   : > { %p718_p7 = scmp.ge.s32.totalorder %s923_s19, 1  ;;  %p178_p9 = scmp.lt.s32.totalorder %s923_s19, 5 }
   0xd   : > { %s1228_s23 = smov (%p30_p4, %s1226_s23), 0  ;;  %p1009_p8 = por %p134_p6, %p133_p5 }
   0xe   : > { %s112_s27 = ssub.s32 %s919_s18, %s1228_s23  ;;  %s117_s28 = sadd.s32 1, %s903_s14 }
   0xf   : > { %s114_s29 = sor.u32 %s113_s24, %s112_s27  ;;  %p179_p10 = pnand %p718_p7, %p178_p9 }
  0x10   : > { %p115_p11 = scmp.eq.s32.totalorder %s114_s29, 0  ;;  %p214_p12 = scmp.lt.s32.totalorder (!%p179_p10), %s911_s16, 1  ;;  %v925_v0 = vmov (!%p179_p10), 0.0   ;;  %vm317_vm0 = vcmask (!%p179_p10), 1042432   ;;  %vm268_vm1 = vcmask (!%p179_p10), 23552   ;;  %v517_v20 = vlaneseq (!%p179_p10) }
  0x11   : > { %182 = sbr.rel (%p179_p10) target bundleno = 452 (0x1c4), region = 32  ;;  %p221_p13 = scmp.lt.s32.totalorder (!%p179_p10), %s907_s15, 1  ;;  %386 = vmatprep.mubr.f32.mxu0 (!%p179_p10), %v925_v0  ;;  %434 = vmatprep.mubr.f32.mxu1 (!%p179_p10), %v925_v0 }
  0x12   : > { %s1018_s30 = scalar_select %p115_p11, %s903_s14, %s117_s28  }
  0x13   : > { %v518_v21 = vshrl.u32 (!%p179_p10), %v517_v20, 7  ;;  %s926_s28 = smov (!%p179_p10), [#allocation2]  }
  0x14   : > { %s833_s29 = sshll.u32 (!%p179_p10), %s926_s28, 4  ;;  %s834_s29 = int_to_ptr.vmem [resolvable:$false] %s833_s29 }
  0x15   : > { %v519_v22 = vsub.s32 (!%p179_p10), 0, %v518_v21  ;;  %v523_v24 = vsub.s32 (!%p179_p10), 1, %v518_v21 }
  0x18   : > { %s1025_s4 = scalar_select %p214_p12, %s911_s16, 1 }
  0x19   : > { %s222_s5 = scalar_select %p221_p13, %s907_s15, 1 }
  0x1a   : > { %s722_s6 = sshll.u32 %s1025_s4, 1  ;;  %s750_s7 = sshll.u32 %s1025_s4, 3 }
  0x1b   : > { %s224_s8 = sadd.s32 %s722_s6, %s222_s5  ;;  %s218_s20 = scalar_lea.vmem %s1210_s0, %s750_s7 }
  0x1c   : > { %s723_s9 = sshll.u32 %s224_s8, 2  ;;  %v233_v1 = vld [vmem:[%s218_s20] sm:$0x77]  ;;  %s230_s5 = scalar_lea.vmem %s1212_s2, %s722_s6 }
  0x1d   : > { %s226_s27 = scalar_lea.vmem %s1211_s1, %s723_s9  ;;  %v267_v3 = vcombine.high %v233_v1, %v233_v1  ;;  %v515_v23 = vld [vmem:[%s230_s5] sm:$0x3]  ;;  %s211_s7 = sand.u32 1, %s899_s13  }
  0x1e   : > { %v232_v2 = vld [vmem:[%s226_s27] sm:$0x7]  ;;  %v1074_v25 = vrot.slane %v515_v23, %v519_v22  ;;  %s719_s8 = sshll.u32 %s211_s7, 8  ;;  %v1078_v26 = vrot.slane %v515_v23, %v523_v24  ;;  %s751_s6 = sshll.u32 %s907_s15, 5 }
  0x1f   : > { %234 = vxpose.xlu0.b32.start.end [1/1] (short) %v232_v2, 128  ;;  %725 = vmatprep.subr.msk.mxu0 %vm317_vm0, %v267_v3  ;;  %s1082_s4 = scalar_lea.vmem [#allocation2], %s719_s8  ;;  %s746_s9 = sshll.u32 %s911_s16, 6 }
  0x20   : > { %752 = vmatprep.subr.msk.mxu1 %vm317_vm0, %v267_v3  ;;  %726 = vmatpush1.msk.msra.mxu0 %vm317_vm0, %v233_v1  ;;  %s605_s10 = sadd.s32 %s751_s6, %s746_s9  ;;  %s608_s16 = sshll.u32 %s1082_s4, 4  ;;  %s1151_s16 = int_to_ptr.vmem [resolvable:$true] %s608_s16 }
  0x21   : > { %753 = vmatpush1.msk.msra.mxu1 %vm317_vm0, %v233_v1  ;;  %s747_s15 = sshll.u32 %s605_s10, 7  ;;  %s1158_s24 = scalar_lea.sflag [#allocation3], %s211_s7 }
  0x22   : > { %s1149_s21 = scalar_lea.hbm %s1213_s3, %s747_s15  ;;  %s829_s27 = scalar_lea.vmem %s1151_s16, 4096 }
  0x23   : > { %p830_p0 = scmp.ne.s32.totalorder %s1151_s16, %s829_s27  ;;  %s835_s5 = scalar_lea.vmem %s834_s29, 8192 }
  0x24   : > { %p836_p4 = scmp.lt.s32.totalorder %s1151_s16, %s834_s29  ;;  %p837_p5 = scmp.lt.s32.totalorder %s835_s5, %s829_s27 }
  0x25   : > { %p831_p1 = pnand %p830_p0, %p1000_p3 }
  0x26   : > { %p838_p6 = por %p837_p5, %p836_p4 }
  0x27   : > { %p832_p2 = pneg %p831_p1 }
  0x29   : > { %p839_p7 = pnand %p838_p6, %p832_p2 }
  0x9f   : > { %v250_v4 = vpop.trf.xlu0 }
  0xa0   : > { %727 = vmatmul.mubr.msk.f32.vlgmr.msra.gmra.mrb[0].mxu0 %vm268_vm1, %v250_v4 }
  0xa1   : > { %392 = vmatprep.mubr.f32.mxu0 %v925_v0 }
  0xa3   : > { %v251_v5 = vpop.trf.xlu0 }
  0xa4   : > { %728 = vmatmul.mubr.msk.f32.gmra.mrb[2].mxu0 %vm268_vm1, %v251_v5 }
  0xa5   : > { %398 = vmatprep.mubr.f32.mxu0 %v925_v0 }
  0xa7   : > { %v252_v6 = vpop.trf.xlu0 }
  0xa8   : > { %729 = vmatmul.mubr.msk.f32.gmra.mrb[4].mxu0 %vm268_vm1, %v252_v6 }
  0xa9   : > { %404 = vmatprep.mubr.f32.mxu0 %v925_v0 }
  0xab   : > { %v253_v7 = vpop.trf.xlu0 }
  0xac   : > { %730 = vmatmul.mubr.msk.f32.gmra.mrb[6].mxu0 %vm268_vm1, %v253_v7 }
  0xad   : > { %410 = vmatprep.mubr.f32.mxu0 %v925_v0 }
  0xaf   : > { %v254_v8 = vpop.trf.xlu0 }
  0xb0   : > { %731 = vmatmul.mubr.msk.f32.gmra.mrb[8].mxu0 %vm268_vm1, %v254_v8 }
  0xb1   : > { %416 = vmatprep.mubr.f32.mxu0 %v925_v0 }
  0xb3   : > { %v255_v9 = vpop.trf.xlu0 }
  0xb4   : > { %732 = vmatmul.mubr.msk.f32.gmra.mrb[10].mxu0 %vm268_vm1, %v255_v9 }
  0xb5   : > { %422 = vmatprep.mubr.f32.mxu0 %v925_v0 }
  0xb7   : > { %v256_v10 = vpop.trf.xlu0 }
  0xb8   : > { %733 = vmatmul.mubr.msk.f32.gmra.mrb[12].mxu0 %vm268_vm1, %v256_v10 }
  0xb9   : > { %428 = vmatprep.mubr.f32.mxu0 %v925_v0 }
  0xbb   : > { %v257_v11 = vpop.trf.xlu0 }
  0xbc   : > { %734 = vmatmul.mubr.msk.f32.gmra.mrb[14].mxu0 %vm268_vm1, %v257_v11 }
  0xbf   : > { %v258_v12 = vpop.trf.xlu0 }
  0xc0   : > { %735 = vmatmul.mubr.msk.f32.vlgmr.msra.gmra.mrb[0].mxu1 %vm268_vm1, %v258_v12 }
  0xc1   : > { %440 = vmatprep.mubr.f32.mxu1 %v925_v0 }
  0xc3   : > { %v259_v13 = vpop.trf.xlu0 }
  0xc4   : > { %736 = vmatmul.mubr.msk.f32.gmra.mrb[2].mxu1 %vm268_vm1, %v259_v13 }
  0xc5   : > { %446 = vmatprep.mubr.f32.mxu1 %v925_v0 }
  0xc7   : > { %v260_v14 = vpop.trf.xlu0 }
  0xc8   : > { %737 = vmatmul.mubr.msk.f32.gmra.mrb[4].mxu1 %vm268_vm1, %v260_v14 }
  0xc9   : > { %452 = vmatprep.mubr.f32.mxu1 %v925_v0 }
  0xcb   : > { %v261_v15 = vpop.trf.xlu0 }
  0xcc   : > { %738 = vmatmul.mubr.msk.f32.gmra.mrb[6].mxu1 %vm268_vm1, %v261_v15 }
  0xcd   : > { %458 = vmatprep.mubr.f32.mxu1 %v925_v0 }
  0xcf   : > { %v262_v16 = vpop.trf.xlu0 }
  0xd0   : > { %739 = vmatmul.mubr.msk.f32.gmra.mrb[8].mxu1 %vm268_vm1, %v262_v16 }
  0xd1   : > { %464 = vmatprep.mubr.f32.mxu1 %v925_v0 }
  0xd3   : > { %v263_v17 = vpop.trf.xlu0 }
  0xd4   : > { %740 = vmatmul.mubr.msk.f32.gmra.mrb[10].mxu1 %vm268_vm1, %v263_v17 }
  0xd5   : > { %470 = vmatprep.mubr.f32.mxu1 %v925_v0 }
  0xd7   : > { %v264_v18 = vpop.trf.xlu0 }
  0xd8   : > { %741 = vmatmul.mubr.msk.f32.gmra.mrb[12].mxu1 %vm268_vm1, %v264_v18 }
  0xd9   : > { %476 = vmatprep.mubr.f32.mxu1 %v925_v0 }
  0xdb   : > { %v265_v19 = vpop.trf.xlu0 }
  0xdc   : > { %742 = vmatmul.mubr.msk.f32.gmra.mrb[14].mxu1 %vm268_vm1, %v265_v19 }
 0x173   : > { %v388_v27 = vpop.f32.mrb[0].mxu0 }
 0x174   : > { %v483_v28 = vmul.f32 2.0, %v388_v27  ;;  %v390_v29 = vpop.f32.mrb[1].mxu0 }
 0x175   : > { %v484_v30 = vmul.f32 2.0, %v390_v29 }
 0x176   : > { %v527_v31 = vsub.f32 %v483_v28, %v1074_v25 }
 0x177   : > { %v528_v32 = vsub.f32 %v484_v30, %v1078_v26  ;;  %v394_v33 = vpop.f32.mrb[2].mxu0 }
 0x178   : > { %559 = vst [vmem:[%s1082_s4] sm:$0xff] %v527_v31  ;;  %v485_v34 = vmul.f32 2.0, %v394_v33  ;;  %v396_v35 = vpop.f32.mrb[3].mxu0 }
 0x179   : > { %560 = vst [vmem:[%s1082_s4 + $0x8] sm:$0xff] %v528_v32  ;;  %v486_v36 = vmul.f32 2.0, %v396_v35 }
 0x17a   : > { %v529_v37 = vsub.f32 %v485_v34, %v1074_v25 }
 0x17b   : > { %v530_v38 = vsub.f32 %v486_v36, %v1078_v26  ;;  %v400_v39 = vpop.f32.mrb[4].mxu0 }
 0x17c   : > { %561 = vst [vmem:[%s1082_s4 + $0x10] sm:$0xff] %v529_v37  ;;  %v487_v40 = vmul.f32 2.0, %v400_v39  ;;  %v402_v41 = vpop.f32.mrb[5].mxu0 }
 0x17d   : > { %562 = vst [vmem:[%s1082_s4 + $0x18] sm:$0xff] %v530_v38  ;;  %v488_v42 = vmul.f32 2.0, %v402_v41 }
 0x17e   : > { %v531_v43 = vsub.f32 %v487_v40, %v1074_v25 }
 0x17f   : > { %v532_v44 = vsub.f32 %v488_v42, %v1078_v26  ;;  %v406_v45 = vpop.f32.mrb[6].mxu0 }
 0x180   : > { %563 = vst [vmem:[%s1082_s4 + $0x20] sm:$0xff] %v531_v43  ;;  %v489_v46 = vmul.f32 2.0, %v406_v45  ;;  %v408_v47 = vpop.f32.mrb[7].mxu0 }
 0x181   : > { %564 = vst [vmem:[%s1082_s4 + $0x28] sm:$0xff] %v532_v44  ;;  %v490_v48 = vmul.f32 2.0, %v408_v47 }
 0x182   : > { %v533_v49 = vsub.f32 %v489_v46, %v1074_v25 }
 0x183   : > { %v534_v50 = vsub.f32 %v490_v48, %v1078_v26  ;;  %v412_v51 = vpop.f32.mrb[8].mxu0 }
 0x184   : > { %565 = vst [vmem:[%s1082_s4 + $0x30] sm:$0xff] %v533_v49  ;;  %v491_v52 = vmul.f32 2.0, %v412_v51  ;;  %v414_v53 = vpop.f32.mrb[9].mxu0 }
 0x185   : > { %566 = vst [vmem:[%s1082_s4 + $0x38] sm:$0xff] %v534_v50  ;;  %v492_v54 = vmul.f32 2.0, %v414_v53 }
 0x186   : > { %v535_v55 = vsub.f32 %v491_v52, %v1074_v25 }
 0x187   : > { %v536_v56 = vsub.f32 %v492_v54, %v1078_v26  ;;  %v418_v57 = vpop.f32.mrb[10].mxu0 }
 0x188   : > { %567 = vst [vmem:[%s1082_s4 + $0x40] sm:$0xff] %v535_v55  ;;  %v493_v58 = vmul.f32 2.0, %v418_v57  ;;  %v420_v59 = vpop.f32.mrb[11].mxu0 }
 0x189   : > { %568 = vst [vmem:[%s1082_s4 + $0x48] sm:$0xff] %v536_v56  ;;  %v494_v60 = vmul.f32 2.0, %v420_v59 }
 0x18a   : > { %v537_v61 = vsub.f32 %v493_v58, %v1074_v25 }
 0x18b   : > { %v538_v62 = vsub.f32 %v494_v60, %v1078_v26  ;;  %v424_v63 = vpop.f32.mrb[12].mxu0 }
 0x18c   : > { %569 = vst [vmem:[%s1082_s4 + $0x50] sm:$0xff] %v537_v61  ;;  %v495_v0 = vmul.f32 2.0, %v424_v63  ;;  %v426_v1 = vpop.f32.mrb[13].mxu0 }
 0x18d   : > { %570 = vst [vmem:[%s1082_s4 + $0x58] sm:$0xff] %v538_v62  ;;  %v496_v2 = vmul.f32 2.0, %v426_v1 }
 0x18e   : > { %v539_v3 = vsub.f32 %v495_v0, %v1074_v25 }
 0x18f   : > { %v540_v4 = vsub.f32 %v496_v2, %v1078_v26  ;;  %v430_v5 = vpop.f32.mrb[14].mxu0 }
 0x190   : > { %571 = vst [vmem:[%s1082_s4 + $0x60] sm:$0xff] %v539_v3  ;;  %v497_v6 = vmul.f32 2.0, %v430_v5  ;;  %v432_v7 = vpop.f32.mrb[15].mxu0 }
 0x191   : > { %572 = vst [vmem:[%s1082_s4 + $0x68] sm:$0xff] %v540_v4  ;;  %v498_v8 = vmul.f32 2.0, %v432_v7 }
 0x192   : > { %v541_v9 = vsub.f32 %v497_v6, %v1074_v25 }
 0x193   : > { %v542_v10 = vsub.f32 %v498_v8, %v1078_v26  ;;  %v436_v11 = vpop.f32.mrb[0].mxu1 }
 0x194   : > { %573 = vst [vmem:[%s1082_s4 + $0x70] sm:$0xff] %v541_v9  ;;  %v499_v12 = vmul.f32 2.0, %v436_v11  ;;  %v438_v13 = vpop.f32.mrb[1].mxu1 }
 0x195   : > { %574 = vst [vmem:[%s1082_s4 + $0x78] sm:$0xff] %v542_v10  ;;  %v500_v14 = vmul.f32 2.0, %v438_v13 }
 0x196   : > { %v543_v15 = vsub.f32 %v499_v12, %v1074_v25 }
 0x197   : > { %v544_v16 = vsub.f32 %v500_v14, %v1078_v26  ;;  %v442_v17 = vpop.f32.mrb[2].mxu1 }
 0x198   : > { %575 = vst [vmem:[%s1082_s4 + $0x80] sm:$0xff] %v543_v15  ;;  %v501_v18 = vmul.f32 2.0, %v442_v17  ;;  %v444_v19 = vpop.f32.mrb[3].mxu1 }
 0x199   : > { %576 = vst [vmem:[%s1082_s4 + $0x88] sm:$0xff] %v544_v16  ;;  %v502_v20 = vmul.f32 2.0, %v444_v19 }
 0x19a   : > { %v545_v21 = vsub.f32 %v501_v18, %v1074_v25 }
 0x19b   : > { %v546_v22 = vsub.f32 %v502_v20, %v1078_v26  ;;  %v448_v23 = vpop.f32.mrb[4].mxu1 }
 0x19c   : > { %577 = vst [vmem:[%s1082_s4 + $0x90] sm:$0xff] %v545_v21  ;;  %v503_v24 = vmul.f32 2.0, %v448_v23  ;;  %v450_v27 = vpop.f32.mrb[5].mxu1 }
 0x19d   : > { %578 = vst [vmem:[%s1082_s4 + $0x98] sm:$0xff] %v546_v22  ;;  %v504_v28 = vmul.f32 2.0, %v450_v27 }
 0x19e   : > { %v547_v29 = vsub.f32 %v503_v24, %v1074_v25 }
 0x19f   : > { %v548_v30 = vsub.f32 %v504_v28, %v1078_v26  ;;  %v454_v31 = vpop.f32.mrb[6].mxu1 }
 0x1a0   : > { %579 = vst [vmem:[%s1082_s4 + $0xa0] sm:$0xff] %v547_v29  ;;  %v505_v32 = vmul.f32 2.0, %v454_v31  ;;  %v456_v33 = vpop.f32.mrb[7].mxu1 }
 0x1a1   : > { %580 = vst [vmem:[%s1082_s4 + $0xa8] sm:$0xff] %v548_v30  ;;  %v506_v34 = vmul.f32 2.0, %v456_v33 }
 0x1a2   : > { %v549_v35 = vsub.f32 %v505_v32, %v1074_v25 }
 0x1a3   : > { %v550_v36 = vsub.f32 %v506_v34, %v1078_v26  ;;  %v460_v37 = vpop.f32.mrb[8].mxu1 }
 0x1a4   : > { %581 = vst [vmem:[%s1082_s4 + $0xb0] sm:$0xff] %v549_v35  ;;  %v507_v38 = vmul.f32 2.0, %v460_v37  ;;  %v462_v39 = vpop.f32.mrb[9].mxu1 }
 0x1a5   : > { %582 = vst [vmem:[%s1082_s4 + $0xb8] sm:$0xff] %v550_v36  ;;  %v508_v40 = vmul.f32 2.0, %v462_v39 }
 0x1a6   : > { %v551_v41 = vsub.f32 %v507_v38, %v1074_v25 }
 0x1a7   : > { %v552_v42 = vsub.f32 %v508_v40, %v1078_v26  ;;  %v466_v43 = vpop.f32.mrb[10].mxu1 }
 0x1a8   : > { %583 = vst [vmem:[%s1082_s4 + $0xc0] sm:$0xff] %v551_v41  ;;  %v509_v44 = vmul.f32 2.0, %v466_v43  ;;  %v468_v45 = vpop.f32.mrb[11].mxu1 }
 0x1a9   : > { %584 = vst [vmem:[%s1082_s4 + $0xc8] sm:$0xff] %v552_v42  ;;  %v510_v46 = vmul.f32 2.0, %v468_v45 }
 0x1aa   : > { %v553_v47 = vsub.f32 %v509_v44, %v1074_v25 }
 0x1ab   : > { %v554_v48 = vsub.f32 %v510_v46, %v1078_v26  ;;  %v472_v49 = vpop.f32.mrb[12].mxu1 }
 0x1ac   : > { %585 = vst [vmem:[%s1082_s4 + $0xd0] sm:$0xff] %v553_v47  ;;  %v511_v50 = vmul.f32 2.0, %v472_v49  ;;  %v474_v51 = vpop.f32.mrb[13].mxu1 }
 0x1ad   : > { %586 = vst [vmem:[%s1082_s4 + $0xd8] sm:$0xff] %v554_v48  ;;  %v512_v52 = vmul.f32 2.0, %v474_v51 }
 0x1ae   : > { %v555_v53 = vsub.f32 %v511_v50, %v1074_v25 }
 0x1af   : > { %v556_v54 = vsub.f32 %v512_v52, %v1078_v26  ;;  %v478_v55 = vpop.f32.mrb[14].mxu1 }
 0x1b0   : > { %587 = vst [vmem:[%s1082_s4 + $0xe0] sm:$0xff] %v555_v53  ;;  %v513_v56 = vmul.f32 2.0, %v478_v55  ;;  %v480_v57 = vpop.f32.mrb[15].mxu1 }
 0x1b1   : > { %588 = vst [vmem:[%s1082_s4 + $0xe8] sm:$0xff] %v556_v54  ;;  %v514_v58 = vmul.f32 2.0, %v480_v57 }
 0x1b2   : > { %v557_v59 = vsub.f32 %v513_v56, %v1074_v25 }
 0x1b3   : > { %v558_v60 = vsub.f32 %v514_v58, %v1078_v26 }
 0x1b4   : > { %589 = vst [vmem:[%s1082_s4 + $0xf0] sm:$0xff] %v557_v59 }
 0x1b5   : > { %590 = vst [vmem:[%s1082_s4 + $0xf8] sm:$0xff] %v558_v60 }
 0x1b6   : > { %842 = shalt.err (!%p839_p7)
}
 0x1b7   : > { %s843_s7 = scalar_lea.hbm %s1149_s21, 4096  ;;  %s847_s6 = scalar_lea.hbm %s1213_s3, 16384 }
 0x1b8   : > { %p844_p9 = scmp.ne.s32.totalorder %s1149_s21, %s843_s7  ;;  %p848_p12 = scmp.lt.u32.totalorder %s1149_s21, %s1213_s3 }
 0x1b9   : > { %p849_p13 = scmp.lt.u32.totalorder %s847_s6, %s843_s7  ;;  %p851_p1 = scmp.lt.u32.totalorder %s843_s7, %s1149_s21 }
 0x1ba   : > { %p845_p10 = pnand %p844_p9, %p1000_p3 }
 0x1bb   : > { %p850_p0 = por %p849_p13, %p848_p12 }
 0x1bc   : > { %p846_p11 = pneg %p845_p10 }
 0x1bd   : > { %p852_p2 = por %p851_p1, %p850_p0 }
 0x1bf   : > { %p853_p4 = pnand %p852_p2, %p846_p11 }
 0x1c1   : > { %856 = shalt.err (!%p853_p4)
}
 0x1c2   : > { %s927_s15 = smov 256   ;;  %s928_s11 = smov 16  }
 0x1c3   : > { %754 = dma.vmem_to_hbm [thread:$0]  (%p1000_p3), %s1151_s16, 4096, %s1149_s21, %s1158_s24, %s927_s15, %s927_s15, %s928_s11  }
 0x1c4 PF: > { %p760_p5 = scmp.ge.s32.totalorder %s923_s19, 2  ;;  %s623_s20 = sand.u32 1, %s895_s12  }
 0x1c5   : > { %s624_s27 = scalar_lea.sflag [#allocation3], %s623_s20 }
 0x1c6   : > { %p757_p6 = pnand %p760_p5, %p1009_p8 }
 0x1c8   : > { %890 = dma.done.wait (!%p757_p6), %s624_s27, 4096  }
 0x1c9   : > { %892 = vsyncadd (!%p757_p6), %s624_s27, 4294963200  ;;  %s16_s19 = sadd.s32 1, %s923_s19   ;;  %s1216_s12 = smov %s899_s13 }
 0x1ca   : > { %p13_p7 = scmp.ge.s32.totalorder %s16_s19, 6   ;;  %s1217_s13 = smov %s903_s14 }
 0x1cb   : > { %s1218_s14 = smov %s1018_s30  ;;  %s1219_s15 = smov %s915_s17 }
 0x1cc   : > { %s1220_s16 = smov %s919_s18  ;;  %s1221_s17 = smov %s1224_s22 }
 0x1cd   : > { %s1222_s18 = smov %s1228_s23  ;;  %15 = sbr.rel (!%p13_p7) target bundleno = 5 (0x5), region = 73 }
 0x1d4   :  { %629 = vsyncpa [#allocation3], 1 }
 0x1d5   :  { %631 = vsyncpa [#allocation3 + $0x1], 1 }

</bundles_post_ra>
